<compile_context>
chip_gen: v5e
topology: v5e:2x2
jax: 0.10.0
libtpu: 0.0.40
codegen_flags: <defaults>
</compile_context>

<pallas_src>
import jax
import jax.numpy as jnp
from jax.experimental import pallas as pl
from jax.experimental.pallas import tpu as pltpu


def dqn_kernel(x_ref,
               w1_ref, b1_ref,
               w2_ref, b2_ref,
               w3_ref, b3_ref,
               w4_ref, b4_ref,
               o_ref):
    # All matmuls take bf16 operands and accumulate in f32 on the MXU; the
    # bias-add / ReLU stay in f32 on the VPU.
    # layer 1: Linear(input_size, 256) + ReLU   (Dropout(0.2) -> identity at inference)
    h = jnp.dot(x_ref[...], w1_ref[...], preferred_element_type=jnp.float32)
    h = jnp.maximum(h + b1_ref[...], 0.0)

    # layer 2: Linear(256, 128) + ReLU          (Dropout(0.2) -> identity at inference)
    h = jnp.dot(h.astype(jnp.bfloat16), w2_ref[...], preferred_element_type=jnp.float32)
    h = jnp.maximum(h + b2_ref[...], 0.0)

    # layer 3: Linear(128, 64 -> padded 128) + ReLU  (padded cols stay exactly 0)
    h = jnp.dot(h.astype(jnp.bfloat16), w3_ref[...], preferred_element_type=jnp.float32)
    h = jnp.maximum(h + b3_ref[...], 0.0)

    # layer 4: Linear(64 -> padded 128, out -> padded 128)
    out = jnp.dot(h.astype(jnp.bfloat16), w4_ref[...], preferred_element_type=jnp.float32)
    o_ref[...] = (out + b4_ref[...]).astype(o_ref.dtype)


def _round_up(n, m):
    return ((n + m - 1) // m) * m


def _pad_axis(a, axis, multiple):
    pad = (-a.shape[axis]) % multiple
    if pad == 0:
        return a
    widths = [(0, 0)] * a.ndim
    widths[axis] = (0, pad)
    return jnp.pad(a, widths)


def dqn_forward(x, params, *, tb=512, trim_output=True):
    """x: [B, input_size] f32; params: list of (W [in,out] f32, b [1,out] f32).

    trim_output=False returns the row/lane-padded [B_pad, out_pad] f32 result and
    skips the post-kernel slice (saves one output-sized HBM roundtrip) for
    downstream consumers that tolerate the zero-padded columns.
    """
    B, in_features = x.shape
    out_size = params[-1][0].shape[1]
    (w1, b1), (w2, b2), (w3, b3), (w4, b4) = params

    # Lane-dense zero padding (numerically exact): in_features, the 64-wide
    # hidden (layer-3 out / layer-4 in), and the output -> multiples of 128.
    xp = _pad_axis(x, 1, 128)
    in_pad = xp.shape[1]
    w1p = _pad_axis(w1, 0, 128)
    w3p = _pad_axis(w3, 1, 128)
    b3p = _pad_axis(b3, 1, 128)
    w4p = _pad_axis(_pad_axis(w4, 0, 128), 1, 128)
    b4p = _pad_axis(b4, 1, 128)
    out_pad = w4p.shape[1]
    k3_pad = w4p.shape[0]

    # bf16 MXU operands; biases stay f32 (f32 bias-add/ReLU path in the kernel).
    xp = xp.astype(jnp.bfloat16)
    w1p, w2b, w3p, w4p = (w.astype(jnp.bfloat16) for w in (w1p, w2, w3p, w4p))

    # Batch tile: multiple of 16 (bf16 sublane packing); default 512 amortizes
    # per-grid-step overhead; ensure >= 2 tiles when the batch allows so v7x's
    # second TensorCore gets work (no effect on single-TC v5e/v6e).
    tb_eff = max(16, min(_round_up(tb, 16), _round_up(B, 16)))
    if B >= 32 and _round_up(B, tb_eff) // tb_eff < 2:
        tb_eff = _round_up((B + 1) // 2, 16)
    pb = _round_up(B, tb_eff)
    xp = _pad_axis(xp, 0, tb_eff)
    grid = (pb // tb_eff,)

    flat_args = [xp, w1p, b1, w2b, b2, w3p, b3p, w4p, b4p]

    # x / out tiles move with the grid; weights & biases are pinned VMEM-resident
    # via constant index_maps so they are DMA'd only once.
    tile_spec = pl.BlockSpec((tb_eff, in_pad), lambda i: (i, 0))
    resident = lambda a: pl.BlockSpec(a.shape, lambda i: (0, 0))
    in_specs = [tile_spec] + [resident(a) for a in flat_args[1:]]
    out_specs = pl.BlockSpec((tb_eff, out_pad), lambda i: (i, 0))

    h1, h2 = w1.shape[1], w2.shape[1]
    flops = 2 * pb * (in_pad * h1 + h1 * h2 + h2 * k3_pad + k3_pad * out_pad)
    bytes_accessed = (xp.size * xp.dtype.itemsize
                      + pb * out_pad * 4
                      + sum(a.size * a.dtype.itemsize for a in flat_args[1:]))
    cost = pl.CostEstimate(flops=flops, transcendentals=0,
                           bytes_accessed=bytes_accessed)

    out_padded = pl.pallas_call(
        dqn_kernel,
        out_shape=jax.ShapeDtypeStruct((pb, out_pad), jnp.float32),
        grid=grid,
        in_specs=in_specs,
        out_specs=out_specs,
        compiler_params=pltpu.CompilerParams(
            dimension_semantics=("parallel",)),  # megacore sharding on v7x
        cost_estimate=cost,
    )(*flat_args)

    if not trim_output:
        return out_padded
    return out_padded[:B, :out_size]


def xavier_uniform(key, fan_in, fan_out, dtype=jnp.float32):
    bound = jnp.sqrt(6.0 / (fan_in + fan_out))
    # stored as [in, out] (transpose of PyTorch's [out, in]; init is symmetric)
    return jax.random.uniform(key, (fan_in, fan_out), dtype, minval=-bound, maxval=bound)


def init_dqn_params(key, input_size, output_size):
    dims = [input_size, 256, 128, 64, output_size]
    params = []
    keys = jax.random.split(key, len(dims) - 1)
    for i, k in enumerate(keys):
        w = xavier_uniform(k, dims[i], dims[i + 1])
        b = jnp.zeros((1, dims[i + 1]), jnp.float32)  # nn.init.constant_(bias, 0)
        params.append((w, b))
    return params


if __name__ == "__main__":
    input_size = 128
    output_size = 64
    batch = 8

    root = jax.random.PRNGKey(0)
    k_x, k_p = jax.random.split(root)

    x = jax.random.normal(k_x, (batch, input_size), jnp.float32)
    params = init_dqn_params(k_p, input_size, output_size)

    out = dqn_forward(x, params)
    out = jax.block_until_ready(out)

    # Reference check in plain f32 JAX (inference-mode dropout == identity).
    # Tolerance is loosened vs the previous f32 kernel because the MXU operands
    # are now bf16 (f32 accumulation).
    ref = x
    for i, (w, b) in enumerate(params):
        ref = ref @ w + b
        if i < len(params) - 1:
            ref = jnp.maximum(ref, 0.0)
    assert out.shape == (batch, output_size)
    err = float(jnp.max(jnp.abs(out - ref)))
    assert jnp.allclose(out, ref, atol=5e-2, rtol=5e-2), f"max abs err {err}"

    print("KERNEL_OK")
</pallas_src>

<mosaic_0001>
module attributes {stable_mosaic.version = 11 : i64} {
  func.func @dqn_kernel(%arg0: i32, %arg1: memref<16x128xbf16, #tpu.memory_space<vmem>>, %arg2: memref<128x256xbf16, #tpu.memory_space<vmem>>, %arg3: memref<1x256xf32, #tpu.memory_space<vmem>>, %arg4: memref<256x128xbf16, #tpu.memory_space<vmem>>, %arg5: memref<1x128xf32, #tpu.memory_space<vmem>>, %arg6: memref<128x128xbf16, #tpu.memory_space<vmem>>, %arg7: memref<1x128xf32, #tpu.memory_space<vmem>>, %arg8: memref<128x128xbf16, #tpu.memory_space<vmem>>, %arg9: memref<1x128xf32, #tpu.memory_space<vmem>>, %arg10: memref<16x128xf32, #tpu.memory_space<vmem>>) attributes {dimension_semantics = [#tpu.dimension_semantics<parallel>], iteration_bounds = array<i64: 1>, scalar_prefetch = 0 : i64, scratch_operands = 0 : i64, tpu.core_type = #tpu.core_type<tc>, window_params = [{transform_indices = @transform_0, window_bounds = array<i64: 16, 128>}, {pipeline_mode = #tpu.pipeline_mode<synchronous>, transform_indices = @transform_1, window_bounds = array<i64: 128, 256>}, {pipeline_mode = #tpu.pipeline_mode<synchronous>, transform_indices = @transform_2, window_bounds = array<i64: 1, 256>}, {pipeline_mode = #tpu.pipeline_mode<synchronous>, transform_indices = @transform_3, window_bounds = array<i64: 256, 128>}, {pipeline_mode = #tpu.pipeline_mode<synchronous>, transform_indices = @transform_4, window_bounds = array<i64: 1, 128>}, {pipeline_mode = #tpu.pipeline_mode<synchronous>, transform_indices = @transform_5, window_bounds = array<i64: 128, 128>}, {pipeline_mode = #tpu.pipeline_mode<synchronous>, transform_indices = @transform_6, window_bounds = array<i64: 1, 128>}, {pipeline_mode = #tpu.pipeline_mode<synchronous>, transform_indices = @transform_7, window_bounds = array<i64: 128, 128>}, {pipeline_mode = #tpu.pipeline_mode<synchronous>, transform_indices = @transform_8, window_bounds = array<i64: 1, 128>}, {transform_indices = @transform_9, window_bounds = array<i64: 16, 128>}]} {
    %c0 = arith.constant 0 : index
    %c0_0 = arith.constant 0 : index
    %0 = vector.load %arg1[%c0, %c0_0] : memref<16x128xbf16, #tpu.memory_space<vmem>>, vector<16x128xbf16>
    %c0_1 = arith.constant 0 : index
    %c0_2 = arith.constant 0 : index
    %1 = vector.load %arg2[%c0_1, %c0_2] : memref<128x256xbf16, #tpu.memory_space<vmem>>, vector<128x256xbf16>
    %cst = arith.constant dense<0.000000e+00> : vector<16x256xf32>
    %2 = tpu.matmul %0, %1, %cst {dimension_numbers = #tpu.dot_dimension_numbers<[1], [0], [0], [1], [0, 0, 1, 1], [], []>} : vector<16x128xbf16>, vector<128x256xbf16>, vector<16x256xf32> -> vector<16x256xf32>
    %c0_3 = arith.constant 0 : index
    %c0_4 = arith.constant 0 : index
    %3 = vector.load %arg3[%c0_3, %c0_4] : memref<1x256xf32, #tpu.memory_space<vmem>>, vector<1x256xf32>
    %4 = vector.broadcast %3 : vector<1x256xf32> to vector<16x256xf32>
    %5 = arith.addf %2, %4 : vector<16x256xf32>
    %cst_5 = arith.constant 0.000000e+00 : f32
    %6 = vector.broadcast %cst_5 : f32 to vector<16x256xf32>
    %7 = arith.maximumf %5, %6 : vector<16x256xf32>
    %8 = arith.truncf %7 : vector<16x256xf32> to vector<16x256xbf16>
    %c0_6 = arith.constant 0 : index
    %c0_7 = arith.constant 0 : index
    %9 = vector.load %arg4[%c0_6, %c0_7] : memref<256x128xbf16, #tpu.memory_space<vmem>>, vector<256x128xbf16>
    %cst_8 = arith.constant dense<0.000000e+00> : vector<16x128xf32>
    %10 = tpu.matmul %8, %9, %cst_8 {dimension_numbers = #tpu.dot_dimension_numbers<[1], [0], [0], [1], [0, 0, 1, 1], [], []>} : vector<16x256xbf16>, vector<256x128xbf16>, vector<16x128xf32> -> vector<16x128xf32>
    %c0_9 = arith.constant 0 : index
    %c0_10 = arith.constant 0 : index
    %11 = vector.load %arg5[%c0_9, %c0_10] : memref<1x128xf32, #tpu.memory_space<vmem>>, vector<1x128xf32>
    %12 = vector.broadcast %11 : vector<1x128xf32> to vector<16x128xf32>
    %13 = arith.addf %10, %12 : vector<16x128xf32>
    %cst_11 = arith.constant 0.000000e+00 : f32
    %14 = vector.broadcast %cst_11 : f32 to vector<16x128xf32>
    %15 = arith.maximumf %13, %14 : vector<16x128xf32>
    %16 = arith.truncf %15 : vector<16x128xf32> to vector<16x128xbf16>
    %c0_12 = arith.constant 0 : index
    %c0_13 = arith.constant 0 : index
    %17 = vector.load %arg6[%c0_12, %c0_13] : memref<128x128xbf16, #tpu.memory_space<vmem>>, vector<128x128xbf16>
    %cst_14 = arith.constant dense<0.000000e+00> : vector<16x128xf32>
    %18 = tpu.matmul %16, %17, %cst_14 {dimension_numbers = #tpu.dot_dimension_numbers<[1], [0], [0], [1], [0, 0, 1, 1], [], []>} : vector<16x128xbf16>, vector<128x128xbf16>, vector<16x128xf32> -> vector<16x128xf32>
    %c0_15 = arith.constant 0 : index
    %c0_16 = arith.constant 0 : index
    %19 = vector.load %arg7[%c0_15, %c0_16] : memref<1x128xf32, #tpu.memory_space<vmem>>, vector<1x128xf32>
    %20 = vector.broadcast %19 : vector<1x128xf32> to vector<16x128xf32>
    %21 = arith.addf %18, %20 : vector<16x128xf32>
    %cst_17 = arith.constant 0.000000e+00 : f32
    %22 = vector.broadcast %cst_17 : f32 to vector<16x128xf32>
    %23 = arith.maximumf %21, %22 : vector<16x128xf32>
    %24 = arith.truncf %23 : vector<16x128xf32> to vector<16x128xbf16>
    %c0_18 = arith.constant 0 : index
    %c0_19 = arith.constant 0 : index
    %25 = vector.load %arg8[%c0_18, %c0_19] : memref<128x128xbf16, #tpu.memory_space<vmem>>, vector<128x128xbf16>
    %cst_20 = arith.constant dense<0.000000e+00> : vector<16x128xf32>
    %26 = tpu.matmul %24, %25, %cst_20 {dimension_numbers = #tpu.dot_dimension_numbers<[1], [0], [0], [1], [0, 0, 1, 1], [], []>} : vector<16x128xbf16>, vector<128x128xbf16>, vector<16x128xf32> -> vector<16x128xf32>
    %c0_21 = arith.constant 0 : index
    %c0_22 = arith.constant 0 : index
    %27 = vector.load %arg9[%c0_21, %c0_22] : memref<1x128xf32, #tpu.memory_space<vmem>>, vector<1x128xf32>
    %28 = vector.broadcast %27 : vector<1x128xf32> to vector<16x128xf32>
    %29 = arith.addf %26, %28 : vector<16x128xf32>
    %c0_23 = arith.constant 0 : index
    %c0_24 = arith.constant 0 : index
    %30 = vector.load %arg10[%c0_23, %c0_24] : memref<16x128xf32, #tpu.memory_space<vmem>>, vector<16x128xf32>
    tpu.vector_store %arg10[%c0_23, %c0_24], %29 {strides = array<i32>} : memref<16x128xf32, #tpu.memory_space<vmem>>, vector<16x128xf32>,
    return
  }
  func.func @transform_0(%arg0: i32) -> (i32, i32) {
    %c0_i32 = arith.constant 0 : i32
    %c0_i32_0 = arith.constant 0 : i32
    return %arg0, %c0_i32 : i32, i32
  }
  func.func @transform_1(%arg0: i32) -> (i32, i32) {
    %c0_i32 = arith.constant 0 : i32
    %c0_i32_0 = arith.constant 0 : i32
    %c0_i32_1 = arith.constant 0 : i32
    return %c0_i32, %c0_i32_0 : i32, i32
  }
  func.func @transform_2(%arg0: i32) -> (i32, i32) {
    %c0_i32 = arith.constant 0 : i32
    %c0_i32_0 = arith.constant 0 : i32
    %c0_i32_1 = arith.constant 0 : i32
    return %c0_i32, %c0_i32_0 : i32, i32
  }
  func.func @transform_3(%arg0: i32) -> (i32, i32) {
    %c0_i32 = arith.constant 0 : i32
    %c0_i32_0 = arith.constant 0 : i32
    %c0_i32_1 = arith.constant 0 : i32
    return %c0_i32, %c0_i32_0 : i32, i32
  }
  func.func @transform_4(%arg0: i32) -> (i32, i32) {
    %c0_i32 = arith.constant 0 : i32
    %c0_i32_0 = arith.constant 0 : i32
    %c0_i32_1 = arith.constant 0 : i32
    return %c0_i32, %c0_i32_0 : i32, i32
  }
  func.func @transform_5(%arg0: i32) -> (i32, i32) {
    %c0_i32 = arith.constant 0 : i32
    %c0_i32_0 = arith.constant 0 : i32
    %c0_i32_1 = arith.constant 0 : i32
    return %c0_i32, %c0_i32_0 : i32, i32
  }
  func.func @transform_6(%arg0: i32) -> (i32, i32) {
    %c0_i32 = arith.constant 0 : i32
    %c0_i32_0 = arith.constant 0 : i32
    %c0_i32_1 = arith.constant 0 : i32
    return %c0_i32, %c0_i32_0 : i32, i32
  }
  func.func @transform_7(%arg0: i32) -> (i32, i32) {
    %c0_i32 = arith.constant 0 : i32
    %c0_i32_0 = arith.constant 0 : i32
    %c0_i32_1 = arith.constant 0 : i32
    return %c0_i32, %c0_i32_0 : i32, i32
  }
  func.func @transform_8(%arg0: i32) -> (i32, i32) {
    %c0_i32 = arith.constant 0 : i32
    %c0_i32_0 = arith.constant 0 : i32
    %c0_i32_1 = arith.constant 0 : i32
    return %c0_i32, %c0_i32_0 : i32, i32
  }
  func.func @transform_9(%arg0: i32) -> (i32, i32) {
    %c0_i32 = arith.constant 0 : i32
    %c0_i32_0 = arith.constant 0 : i32
    return %arg0, %c0_i32 : i32, i32
  }
}

</mosaic_0001>

<bundles_post_ra>
// kernel: tpu_custom_call.1
= control target key start
LH: loop header
LB: loop body
LE: loop exit
PB: predicated region body
PF: predicated region fallthrough
CT: control target
= control target key end

     0   :  { %14 = vsyncpa [#allocation3], 0  ;;  %s1157_s0 = inlined_call_operand.hbm [shape: bf16[16,128], index: 0, kind: input, shape index: {}]   ;;  %s1158_s1 = inlined_call_operand.hbm [shape: bf16[128,256], index: 1, kind: input, shape index: {}]   ;;  %s1159_s2 = inlined_call_operand.hbm [shape: f32[1,256], index: 2, kind: input, shape index: {}]   ;;  %s1160_s3 = inlined_call_operand.hbm [shape: bf16[256,128], index: 3, kind: input, shape index: {}]   ;;  %s1161_s4 = inlined_call_operand.vmem [shape: f32[1,128], index: 4, kind: input, shape index: {}]   ;;  %s1162_s5 = inlined_call_operand.hbm [shape: bf16[128,128], index: 5, kind: input, shape index: {}]   ;;  %s1163_s6 = inlined_call_operand.vmem [shape: f32[1,128], index: 6, kind: input, shape index: {}]   ;;  %s1164_s7 = inlined_call_operand.hbm [shape: bf16[128,128], index: 7, kind: input, shape index: {}]   ;;  %s1165_s8 = inlined_call_operand.vmem [shape: f32[1,128], index: 8, kind: input, shape index: {}]   ;;  %s1166_s9 = inlined_call_operand.hbm [shape: f32[16,128], index: 9, kind: output, shape index: {}]  }
   0x1   :  { %15 = vsyncpa [#allocation6], 0 }
   0x2   :  { %16 = vsyncpa [#allocation9], 0 }
   0x3   :  { %17 = vsyncpa [#allocation12], 0  ;;  %s36_s11 = sshll.u32 %s1158_s1, 4  ;;  %s37_s11 = int_to_ptr.hbm [resolvable:$true] %s36_s11 }
   0x4   :  { %18 = vsyncpa [#allocation4], 0  ;;  %s1060_s12 = smov [#allocation5]   ;;  %s1061_s14 = smov 128  }
   0x5   :  { %s38_s13 = sshll.u32 %s1060_s12, 4  ;;  %s1062_s15 = smov 8   ;;  %s39_s13 = int_to_ptr.vmem [resolvable:$true] %s38_s13 }
   0x6   :  { %44 = dma.hbm_to_vmem [thread:$0]  %s37_s11, 2048, %s39_s13, [#allocation6], %s1061_s14, %s1061_s14, %s1062_s15  }
   0x7   :  { %s60_s18 = sshll.u32 %s1160_s3, 4  ;;  %s1063_s19 = smov [#allocation8]   ;;  %s61_s18 = int_to_ptr.hbm [resolvable:$true] %s60_s18 }
   0x8   :  { %s62_s20 = sshll.u32 %s1063_s19, 4  ;;  %s23_s22 = sshll.u32 %s1157_s0, 4  ;;  %s63_s20 = int_to_ptr.vmem [resolvable:$true] %s62_s20  ;;  %s24_s22 = int_to_ptr.hbm [resolvable:$true] %s23_s22 }
   0x9   :  { %s1064_s23 = smov 64   ;;  %s1065_s24 = smov 4  }
   0xa   :  { %68 = dma.hbm_to_vmem [thread:$0]  %s61_s18, 2048, %s63_s20, [#allocation9], %s1064_s23, %s1064_s23, %s1065_s24  }
   0xb   :  { %s50_s27 = sshll.u32 %s1159_s2, 4  ;;  %s1066_s28 = smov [#allocation2]   ;;  %s51_s27 = int_to_ptr.hbm [resolvable:$true] %s50_s27 }
   0xc   :  { %s25_s29 = sshll.u32 %s1066_s28, 4  ;;  %s1067_s3 = smov [#allocation7]   ;;  %s26_s29 = int_to_ptr.vmem [resolvable:$true] %s25_s29 }
   0xd   :  { %31 = dma.hbm_to_vmem [thread:$0]  %s24_s22, 128, %s26_s29, [#allocation3], %s1064_s23, %s1064_s23, %s1065_s24  }
   0xe   :  { %s52_s30 = sshll.u32 %s1067_s3, 4  ;;  %s75_s0 = sshll.u32 %s1162_s5, 4  ;;  %s53_s30 = int_to_ptr.vmem [resolvable:$true] %s52_s30  ;;  %s76_s0 = int_to_ptr.hbm [resolvable:$true] %s75_s0 }
   0xf   :  { %55 = dma.hbm_to_vmem [thread:$0]  %s51_s27, 32, %s53_s30, [#allocation6]  }
  0x10   :  { %s90_s16 = sshll.u32 %s1164_s7, 4  ;;  %s1068_s17 = smov [#allocation10]   ;;  %s91_s16 = int_to_ptr.hbm [resolvable:$true] %s90_s16 }
  0x11   :  { %s77_s2 = sshll.u32 %s1068_s17, 4  ;;  %s1069_s18 = smov [#allocation11]   ;;  %s78_s2 = int_to_ptr.vmem [resolvable:$true] %s77_s2 }
  0x12   :  { %83 = dma.hbm_to_vmem [thread:$0]  %s76_s0, 1024, %s78_s2, [#allocation9], %s1064_s23, %s1064_s23, %s1065_s24  }
  0x13   :  { %s92_s19 = sshll.u32 %s1069_s18, 4  ;;  %s93_s19 = int_to_ptr.vmem [resolvable:$true] %s92_s19 }
  0x14   :  { %98 = dma.hbm_to_vmem [thread:$0]  %s91_s16, 1024, %s93_s19, [#allocation12], %s1064_s23, %s1064_s23, %s1065_s24  }
  0x15   :  { %1050 = dma.done.wait [#allocation3], 128  }
  0x16   :  { %1051 = vsyncadd [#allocation3], 4294967168 }
  0x17   :  { %1052 = dma.done.wait [#allocation6], 2080  }
  0x18   :  { %1053 = vsyncadd [#allocation6], 4294965216 }
  0x19   :  { %1054 = dma.done.wait [#allocation9], 3072  }
  0x1a   :  { %1055 = vsyncadd [#allocation9], 4294964224 }
  0x1b   :  { %1056 = dma.done.wait [#allocation12], 1024  }
  0x1c   :  { %1057 = vsyncadd [#allocation12], 4294966272  ;;  %v685_v0 = vld [vmem:[#allocation5 + $0x70] sm:$0xf]  ;;  %v835_v1 = vld [vmem:[#allocation5 + $0x74] sm:$0xf0] }
  0x1d   :  { %v834_v2 = vld [vmem:[#allocation5 + $0x74] sm:$0xf]  ;;  %v686_v3 = vor.u32 %v835_v1, %v685_v0  ;;  %v687_v4 = vld [vmem:[#allocation5 + $0x78] sm:$0xf0]  ;;  %v677_v5 = vld [vmem:[#allocation5 + $0x60] sm:$0xf] }
  0x1e   :  { %v833_v6 = vld [vmem:[#allocation5 + $0x64] sm:$0xf0]  ;;  %v690_v7 = vor.u32 %v834_v2, %v687_v4  ;;  %v832_v8 = vld [vmem:[#allocation5 + $0x64] sm:$0xf]  ;;  %v679_v9 = vld [vmem:[#allocation5 + $0x68] sm:$0xf0] }
  0x1f   :  { %235 = vmatpush.bf16.msra.mxu0 %v686_v3  ;;  %v678_v10 = vor.u32 %v833_v6, %v677_v5  ;;  %v682_v11 = vor.u32 %v832_v8, %v679_v9  ;;  %v669_v12 = vld [vmem:[#allocation5 + $0x50] sm:$0xf]  ;;  %v831_v13 = vld [vmem:[#allocation5 + $0x54] sm:$0xf0]  ;;  %v830_v14 = vld [vmem:[#allocation5 + $0x54] sm:$0xf] }
  0x20   :  { %249 = vmatpush.bf16.msra.mxu1 %v690_v7  ;;  %v671_v15 = vld [vmem:[#allocation5 + $0x58] sm:$0xf0]  ;;  %v670_v16 = vor.u32 %v831_v13, %v669_v12  ;;  %v661_v18 = vld [vmem:[#allocation5 + $0x40] sm:$0xf]  ;;  %v829_v19 = vld [vmem:[#allocation5 + $0x44] sm:$0xf0] }
  0x21   :  { %v674_v17 = vor.u32 %v830_v14, %v671_v15  ;;  %v828_v20 = vld [vmem:[#allocation5 + $0x44] sm:$0xf]  ;;  %v663_v21 = vld [vmem:[#allocation5 + $0x48] sm:$0xf0]  ;;  %v662_v22 = vor.u32 %v829_v19, %v661_v18  ;;  %v843_v23 = vld [vmem:[#allocation8 + $0x38] sm:$0xff]  ;;  %s1070_s22 = smov [#allocation13]  }
  0x22   :  { %v851_v24 = vld [vmem:[#allocation8 + $0x78] sm:$0xff]  ;;  %v666_v25 = vor.u32 %v828_v20, %v663_v21  ;;  %v653_v26 = vld [vmem:[#allocation5 + $0x30] sm:$0xf]  ;;  %v826_v28 = vld [vmem:[#allocation5 + $0x34] sm:$0xf]  ;;  %401 = vmatpush.bf16.msra.mxu2 %v843_v23  ;;  %s605_s23 = sshll.u32 %s1070_s22, 4  ;;  %s606_s23 = int_to_ptr.vmem [resolvable:$true] %s605_s23 }
  0x23   :  { %236 = vmatpush.bf16.msra.mxu0 %v678_v10  ;;  %v827_v27 = vld [vmem:[#allocation5 + $0x34] sm:$0xf0]  ;;  %v655_v29 = vld [vmem:[#allocation5 + $0x38] sm:$0xf0]  ;;  %415 = vmatpush.bf16.msra.mxu3 %v851_v24  ;;  %v645_v34 = vld [vmem:[#allocation5 + $0x20] sm:$0xf] }
  0x24   :  { %250 = vmatpush.bf16.msra.mxu1 %v682_v11  ;;  %v842_v30 = vld [vmem:[#allocation8 + $0x30] sm:$0xff]  ;;  %v654_v32 = vor.u32 %v827_v27, %v653_v26  ;;  %v658_v33 = vor.u32 %v826_v28, %v655_v29  ;;  %v825_v35 = vld [vmem:[#allocation5 + $0x24] sm:$0xf0]  ;;  %v824_v36 = vld [vmem:[#allocation5 + $0x24] sm:$0xf] }
  0x25   :  { %v850_v31 = vld [vmem:[#allocation8 + $0x70] sm:$0xff]  ;;  %v647_v37 = vld [vmem:[#allocation5 + $0x28] sm:$0xf0]  ;;  %v646_v40 = vor.u32 %v825_v35, %v645_v34  ;;  %v639_v45 = vld [vmem:[#allocation5 + $0x18] sm:$0xf0] }
  0x26   :  { %402 = vmatpush.bf16.msra.mxu2 %v842_v30  ;;  %v841_v38 = vld [vmem:[#allocation8 + $0x28] sm:$0xff]  ;;  %v650_v41 = vor.u32 %v824_v36, %v647_v37  ;;  %v823_v43 = vld [vmem:[#allocation5 + $0x14] sm:$0xf0]  ;;  %v822_v44 = vld [vmem:[#allocation5 + $0x14] sm:$0xf] }
  0x27   :  { %237 = vmatpush.bf16.msra.mxu0 %v670_v16  ;;  %416 = vmatpush.bf16.msra.mxu3 %v850_v31  ;;  %v849_v39 = vld [vmem:[#allocation8 + $0x68] sm:$0xff]  ;;  %v840_v46 = vld [vmem:[#allocation8 + $0x20] sm:$0xff]  ;;  %v642_v49 = vor.u32 %v822_v44, %v639_v45  ;;  %v819_v56 = vld [vmem:[#allocation2] sm:$0xff] }
  0x28   :  { %251 = vmatpush.bf16.msra.mxu1 %v674_v17  ;;  %v637_v42 = vld [vmem:[#allocation5 + $0x10] sm:$0xf]  ;;  %v848_v47 = vld [vmem:[#allocation8 + $0x60] sm:$0xff]  ;;  %v631_v53 = vld [vmem:[#allocation5 + $0x8] sm:$0xf0] }
  0x29   :  { %v638_v48 = vor.u32 %v823_v43, %v637_v42  ;;  %v629_v50 = vld [vmem:[#allocation5] sm:$0xf]  ;;  %v821_v51 = vld [vmem:[#allocation5 + $0x4] sm:$0xf0]  ;;  %v820_v52 = vld [vmem:[#allocation5 + $0x4] sm:$0xf] }
  0x2a   :  { %403 = vmatpush.bf16.msra.mxu2 %v841_v38  ;;  %v630_v54 = vor.u32 %v821_v51, %v629_v50  ;;  %v634_v55 = vor.u32 %v820_v52, %v631_v53  ;;  %v839_v57 = vld [vmem:[#allocation8 + $0x18] sm:$0xff]  ;;  %v838_v59 = vld [vmem:[#allocation8 + $0x10] sm:$0xff]  ;;  %v837_v61 = vld [vmem:[#allocation8 + $0x8] sm:$0xff] }
  0x2b   :  { %238 = vmatpush.bf16.msra.mxu0 %v662_v22  ;;  %417 = vmatpush.bf16.msra.mxu3 %v849_v39  ;;  %v847_v58 = vld [vmem:[#allocation8 + $0x58] sm:$0xff]  ;;  %v846_v60 = vld [vmem:[#allocation8 + $0x50] sm:$0xff]  ;;  %v845_v62 = vld [vmem:[#allocation8 + $0x48] sm:$0xff] }
  0x2c   :  { %252 = vmatpush.bf16.msra.mxu1 %v666_v25  ;;  %v836_v63 = vld [vmem:[#allocation8] sm:$0xff]  ;;  %v859_v1 = vld [vmem:[#allocation10 + $0x38] sm:$0xff]  ;;  %v858_v2 = vld [vmem:[#allocation10 + $0x30] sm:$0xff] }
  0x2d   :  { %v844_v0 = vld [vmem:[#allocation8 + $0x40] sm:$0xff]  ;;  %v857_v3 = vld [vmem:[#allocation10 + $0x28] sm:$0xff]  ;;  %v143_v5 = vld [vmem:[#allocation7] sm:$0x3] }
  0x2e   :  { %404 = vmatpush.bf16.msra.mxu2 %v840_v46  ;;  %v856_v4 = vld [vmem:[#allocation10 + $0x20] sm:$0xff]  ;;  %v145_v8 = vperm.slane %v143_v5, 0  ;;  %v146_v9 = vperm.slane %v143_v5, 1  ;;  %v855_v22 = vld [vmem:[#allocation10 + $0x18] sm:$0xff]  ;;  %v854_v23 = vld [vmem:[#allocation10 + $0x10] sm:$0xff] }
  0x2f   :  { %239 = vmatpush.bf16.msra.mxu0 %v654_v32  ;;  %418 = vmatpush.bf16.msra.mxu3 %v848_v47  ;;  %v853_v24 = vld [vmem:[#allocation10 + $0x8] sm:$0xff]  ;;  %v852_v25 = vld [vmem:[#allocation10] sm:$0xff]  ;;  %v867_v26 = vld [vmem:[#allocation11 + $0x38] sm:$0xff] }
  0x30   :  { %253 = vmatpush.bf16.msra.mxu1 %v658_v33  ;;  %v866_v27 = vld [vmem:[#allocation11 + $0x30] sm:$0xff]  ;;  %v865_v28 = vld [vmem:[#allocation11 + $0x28] sm:$0xff]  ;;  %v864_v29 = vld [vmem:[#allocation11 + $0x20] sm:$0xff] }
  0x31   :  { %v879_v31 = vld [vmem:[%s1161_s4] ss:$0 sm:$0xff]  ;;  %v863_v42 = vld [vmem:[#allocation11 + $0x18] sm:$0xff]  ;;  %v861_v44 = vld [vmem:[#allocation11 + $0x8] sm:$0xff] }
  0x32   :  { %405 = vmatpush.bf16.msra.mxu2 %v839_v57  ;;  %v862_v43 = vld [vmem:[#allocation11 + $0x10] sm:$0xff]  ;;  %v860_v45 = vld [vmem:[#allocation11] sm:$0xff] }
  0x33   :  { %240 = vmatpush.bf16.msra.mxu0 %v646_v40  ;;  %419 = vmatpush.bf16.msra.mxu3 %v847_v58  ;;  %v880_v47 = vld [vmem:[%s1163_s6] ss:$0 sm:$0xff]  ;;  %s607_s6 = sshll.u32 %s1166_s9, 4  ;;  %s608_s6 = int_to_ptr.hbm [resolvable:$true] %s607_s6 }
  0x34   :  { %254 = vmatpush.bf16.msra.mxu1 %v650_v41 }
  0x36   :  { %406 = vmatpush.bf16.msra.mxu2 %v838_v59 }
  0x37   :  { %241 = vmatpush.bf16.msra.mxu0 %v638_v48  ;;  %420 = vmatpush.bf16.msra.mxu3 %v846_v60 }
  0x38   :  { %255 = vmatpush.bf16.msra.mxu1 %v642_v49 }
  0x3a   :  { %407 = vmatpush.bf16.msra.mxu2 %v837_v61 }
  0x3b   :  { %242 = vmatpush.bf16.msra.mxu0 %v630_v54  ;;  %421 = vmatpush.bf16.msra.mxu3 %v845_v62  ;;  %v881_v54 = vld [vmem:[%s1165_s8] ss:$0 sm:$0xff] }
  0x3c   :  { %256 = vmatpush.bf16.msra.mxu1 %v634_v55 }
  0x3e   :  { %243 = vmatmul.bf16.vlgmr.msra.gmra.mxu0 %v819_v56  ;;  %408 = vmatpush.bf16.msra.mxu2 %v836_v63 }
  0x3f   :  { %257 = vmatmul.bf16.vlgmr.msra.gmra.mxu1 %v819_v56  ;;  %422 = vmatpush.bf16.msra.mxu3 %v844_v0 }
  0x40   :  { %500 = vmatpush.bf16.msrb.mxu0 %v859_v1  ;;  %585 = vmatpush.bf16.msrb.mxu1 %v867_v26 }
  0x44   :  { %501 = vmatpush.bf16.msrb.mxu0 %v858_v2  ;;  %586 = vmatpush.bf16.msrb.mxu1 %v866_v27 }
  0x48   :  { %502 = vmatpush.bf16.msrb.mxu0 %v857_v3  ;;  %587 = vmatpush.bf16.msrb.mxu1 %v865_v28 }
  0x4c   :  { %503 = vmatpush.bf16.msrb.mxu0 %v856_v4  ;;  %588 = vmatpush.bf16.msrb.mxu1 %v864_v29 }
  0x50   :  { %504 = vmatpush.bf16.msrb.mxu0 %v855_v22  ;;  %589 = vmatpush.bf16.msrb.mxu1 %v863_v42 }
  0x54   :  { %505 = vmatpush.bf16.msrb.mxu0 %v854_v23  ;;  %590 = vmatpush.bf16.msrb.mxu1 %v862_v43 }
  0x58   :  { %506 = vmatpush.bf16.msrb.mxu0 %v853_v24  ;;  %591 = vmatpush.bf16.msrb.mxu1 %v861_v44 }
  0x5c   :  { %507 = vmatpush.bf16.msrb.mxu0 %v852_v25  ;;  %592 = vmatpush.bf16.msrb.mxu1 %v860_v45 }
  0xbb   :  { %v244_v6 = vpop.f32.mrf.mxu0 }
  0xbc   :  { %v258_v7 = vpop.f32.mrf.mxu1  ;;  %v245_v10 = vadd.f32 %v244_v6, %v145_v8 }
  0xbd   :  { %v259_v11 = vadd.f32 %v258_v7, %v146_v9 }
  0xbe   :  { %v263_v16 = vmax.f32 %v245_v10, 0.0 }
  0xbf   :  { %v264_v18 = vmax.f32 %v259_v11, 0.0 }
  0xc3   :  { %v246_v12 = vpop.f32.mrf.mxu0 }
  0xc4   :  { %v247_v13 = vadd.f32 %v246_v12, %v145_v8  ;;  %v260_v14 = vpop.f32.mrf.mxu1 }
  0xc5   :  { %v261_v15 = vadd.f32 %v260_v14, %v146_v9 }
  0xc6   :  { %v265_v17 = vmax.f32 %v247_v13, 0.0 }
  0xc7   :  { %v266_v19 = vmax.f32 %v261_v15, 0.0 }
  0xc8   :  { %v267_v20 = vpack.c.bf16 %v265_v17, %v263_v16 }
  0xc9   :  { %v268_v21 = vpack.c.bf16 %v266_v19, %v264_v18 }
  0xca   :  { %409 = vmatmul.bf16.vlgmr.msra.gmra.mxu2 %v267_v20 }
  0xcb   :  { %423 = vmatmul.bf16.vlgmr.msra.gmra.mxu3 %v268_v21 }
 0x14d   :  { %v410_v30 = vpop.f32.mrf.mxu2 }
 0x14e   :  { %v424_v32 = vpop.f32.mrf.mxu3  ;;  %v411_v33 = vadd.f32 %v879_v31, %v410_v30 }
 0x150   :  { %v425_v35 = vadd.f32 %v424_v32, %v411_v33 }
 0x152   :  { %v429_v39 = vmax.f32 %v425_v35, 0.0 }
 0x155   :  { %v412_v34 = vpop.f32.mrf.mxu2 }
 0x156   :  { %v413_v36 = vadd.f32 %v879_v31, %v412_v34  ;;  %v426_v37 = vpop.f32.mrf.mxu3 }
 0x158   :  { %v427_v38 = vadd.f32 %v426_v37, %v413_v36 }
 0x15a   :  { %v430_v40 = vmax.f32 %v427_v38, 0.0 }
 0x15c   :  { %v431_v41 = vpack.c.bf16 %v430_v40, %v429_v39 }
 0x15e   :  { %508 = vmatmul.bf16.vlgmr.msrb.gmra.mxu0 %v431_v41 }
 0x1db   :  { %v509_v46 = vpop.f32.mrf.mxu0 }
 0x1dc   :  { %v510_v48 = vadd.f32 %v880_v47, %v509_v46 }
 0x1de   :  { %v514_v51 = vmax.f32 %v510_v48, 0.0 }
 0x1e3   :  { %v511_v49 = vpop.f32.mrf.mxu0 }
 0x1e4   :  { %v512_v50 = vadd.f32 %v880_v47, %v511_v49 }
 0x1e6   :  { %v515_v52 = vmax.f32 %v512_v50, 0.0 }
 0x1e8   :  { %v516_v53 = vpack.c.bf16 %v515_v52, %v514_v51 }
 0x1ea   :  { %593 = vmatmul.bf16.vlgmr.msrb.gmra.mxu1 %v516_v53 }
 0x267   :  { %v594_v55 = vpop.f32.mrf.mxu1 }
 0x268   :  { %v595_v56 = vadd.f32 %v881_v54, %v594_v55 }
 0x26a   :  { %599 = vst [vmem:[#allocation13] sm:$0xff] %v595_v56 }
 0x26f   :  { %v596_v57 = vpop.f32.mrf.mxu1 }
 0x270   :  { %v597_v58 = vadd.f32 %v881_v54, %v596_v57 }
 0x272   :  { %600 = vst [vmem:[#allocation13 + $0x8] sm:$0xff] %v597_v58 }
 0x273   :  { %613 = dma.vmem_to_hbm [thread:$0]  %s606_s23, 256, %s608_s6, [#allocation4], %s1061_s14, %s1061_s14, %s1062_s15  }
 0x274   :  { %1058 = dma.done.wait [#allocation4], 256  }
 0x275   :  { %1059 = vsyncadd [#allocation4], 4294967040 }
 0x276   :  { %618 = vsyncpa [#allocation3], 1 }
 0x277   :  { %619 = vsyncpa [#allocation6], 1 }
 0x278   :  { %620 = vsyncpa [#allocation9], 1 }
 0x279   :  { %621 = vsyncpa [#allocation12], 1 }
 0x27a   :  { %622 = vsyncpa [#allocation4], 1 }

</bundles_post_ra>
